<compile_context>
chip_gen: v7x
topology: tpu7x:2x2x1
jax: 0.10.0
libtpu: 0.0.40
codegen_flags: <defaults>
</compile_context>

<pallas_src>
import jax
import jax.numpy as jnp
from jax.experimental import pallas as pl
from jax.experimental.pallas import tpu as pltpu

_LANE = 128
_SUB = 8
_MAX_ROWS_PER_TILE = 512          # 512 rows * 128 lanes = 65536 samples per grid step

# Packed-parameter offsets (37 scalars total, PyTorch nn.Linear layout, row-major).
_W1, _B1 = 0, 8                   # w1: (4,2), b1: (4,)
_W2, _B2 = 12, 28                 # w2: (4,4), b2: (4,)
_W3, _B3 = 32, 36                 # w3: (1,4), b3: (1,)
_N_PARAMS = 37


def _ceil_to(n, m):
    return ((n + m - 1) // m) * m


def _sigmoid(z):
    # sigmoid(z) == 0.5 * tanh(z / 2) + 0.5  -> one EUP push instead of exp + divide.
    return 0.5 * jnp.tanh(0.5 * z) + 0.5


def xor_kernel(p_ref, x_ref, o_ref):
    # p_ref: (37,) f32 in SMEM.  x_ref: (2, rows_tile, 128) feature planes.
    # o_ref: (rows_tile, 128) dense output block.
    x0 = x_ref[0]                 # (rows_tile, 128)
    x1 = x_ref[1]

    # fc1 + sigmoid: 4 hidden planes, scalar-times-vector FMAs (weights from SMEM).
    h1 = [
        _sigmoid(p_ref[_W1 + 2 * i] * x0
                 + p_ref[_W1 + 2 * i + 1] * x1
                 + p_ref[_B1 + i])
        for i in range(4)
    ]

    # fc2 + sigmoid.
    h2 = []
    for i in range(4):
        z = p_ref[_B2 + i]
        for j in range(4):
            z = z + p_ref[_W2 + 4 * i + j] * h1[j]
        h2.append(_sigmoid(z))

    # fc3 + sigmoid -> dense (rows_tile, 128) block.
    z = p_ref[_B3]
    for j in range(4):
        z = z + p_ref[_W3 + j] * h2[j]
    o_ref[...] = _sigmoid(z).astype(o_ref.dtype)


def pack_params(p):
    """Flatten PyTorch-layout params into the 37-scalar SMEM array."""
    return jnp.concatenate([
        p["w1"].reshape(-1), p["b1"].reshape(-1),
        p["w2"].reshape(-1), p["b2"].reshape(-1),
        p["w3"].reshape(-1), p["b3"].reshape(-1),
    ]).astype(jnp.float32)


def xor_forward(x, params):
    """x: (B, 2) float32.  params: dict of PyTorch-layout weights.  Returns (B, 1)."""
    B = x.shape[0]
    p_flat = pack_params(params)
    assert p_flat.shape == (_N_PARAMS,)

    # Batch -> dense (rows, 128) layout: sample b lives at (b // 128, b % 128).
    b_pad = _ceil_to(max(B, _LANE), _LANE)
    n_rows = b_pad // _LANE

    if n_rows <= _SUB:
        # Small batch: one grid step, full-extent block (allowed by the tiling rule).
        rows_tile = n_rows
        n_rows_pad = n_rows
    else:
        # Large batch: sublane-aligned tiles, as big as possible (amortize per-step
        # overhead) while keeping >= 2 grid steps so v7x shards across both TCs.
        rows_tile = min(_MAX_ROWS_PER_TILE, _ceil_to((n_rows + 1) // 2, _SUB))
        n_rows_pad = _ceil_to(n_rows, rows_tile)

    b_total = n_rows_pad * _LANE
    grid = (n_rows_pad // rows_tile,)

    # Zero-padded, transposed input as two dense feature planes.  Padded slots
    # compute sigmoid(bias) (finite) and are sliced off below.
    xt = jnp.zeros((2, b_total), jnp.float32).at[:, :B].set(x.T.astype(jnp.float32))
    xt = xt.reshape(2, n_rows_pad, _LANE)

    out = pl.pallas_call(
        xor_kernel,
        out_shape=jax.ShapeDtypeStruct((n_rows_pad, _LANE), jnp.float32),
        grid=grid,
        in_specs=[
            pl.BlockSpec(memory_space=pltpu.MemorySpace.SMEM),          # 37 scalars
            pl.BlockSpec((2, rows_tile, _LANE), lambda i: (0, i, 0)),   # batch tile
        ],
        out_specs=pl.BlockSpec((rows_tile, _LANE), lambda i: (i, 0)),
        compiler_params=pltpu.CompilerParams(
            dimension_semantics=("parallel",),      # shards batch across v7x's 2 TCs
        ),
    )(p_flat, xt)

    # Drop padding, return in the PyTorch (B, 1) orientation.
    return out.reshape(-1)[:B].reshape(B, 1)


def init_params():
    """Deterministic init mimicking nn.Linear's U(-1/sqrt(fan_in), 1/sqrt(fan_in))."""
    key = jax.random.PRNGKey(42)
    ks = jax.random.split(key, 6)

    def uniform(k, shape, fan_in):
        bound = 1.0 / jnp.sqrt(float(fan_in))
        return jax.random.uniform(k, shape, jnp.float32, -bound, bound)

    return {
        "w1": uniform(ks[0], (4, 2), 2), "b1": uniform(ks[1], (4,), 2),
        "w2": uniform(ks[2], (4, 4), 4), "b2": uniform(ks[3], (4,), 4),
        "w3": uniform(ks[4], (1, 4), 4), "b3": uniform(ks[5], (1,), 4),
    }


def xor_reference(x, p):
    h1 = jax.nn.sigmoid(x @ p["w1"].T + p["b1"])
    h2 = jax.nn.sigmoid(h1 @ p["w2"].T + p["b2"])
    h3 = jax.nn.sigmoid(h2 @ p["w3"].T + p["b3"])
    return h3


if __name__ == "__main__":
    params = init_params()
    key = jax.random.PRNGKey(0)

    # B=8: single-grid-step small-batch path (matches the 2-feature XOR module).
    # B=2048: exercises the sublane-tiled, multi-step (v7x two-TC) path.
    for B in (8, 2048):
        k = jax.random.fold_in(key, B)
        x = jax.random.uniform(k, (B, 2), jnp.float32, -0.5, 1.5)

        out = jax.block_until_ready(xor_forward(x, params))
        ref = xor_reference(x, params)

        assert out.shape == (B, 1), out.shape
        assert jnp.allclose(out, ref, atol=2e-5), (B, float(jnp.max(jnp.abs(out - ref))))

    print("KERNEL_OK")
</pallas_src>

<mosaic_0001>
module attributes {stable_mosaic.version = 11 : i64} {
  func.func @xor_kernel(%arg0: i32, %arg1: memref<37xf32, #tpu.memory_space<smem>>, %arg2: memref<2x1x128xf32, #tpu.memory_space<vmem>>, %arg3: memref<1x128xf32, #tpu.memory_space<vmem>>) attributes {dimension_semantics = [#tpu.dimension_semantics<parallel>], iteration_bounds = array<i64: 1>, scalar_prefetch = 0 : i64, scratch_operands = 0 : i64, tpu.core_type = #tpu.core_type<tc>, window_params = [{transform_indices = @transform_0, window_bounds = array<i64: 37>}, {transform_indices = @transform_1, window_bounds = array<i64: 2, 1, 128>}, {transform_indices = @transform_2, window_bounds = array<i64: 1, 128>}]} {
    %c0 = arith.constant 0 : index
    %c0_0 = arith.constant 0 : index
    %c0_1 = arith.constant 0 : index
    %0 = vector.load %arg2[%c0, %c0_0, %c0_1] : memref<2x1x128xf32, #tpu.memory_space<vmem>>, vector<1x1x128xf32>
    %1 = vector.shape_cast %0 : vector<1x1x128xf32> to vector<1x128xf32>
    %c1 = arith.constant 1 : index
    %c0_2 = arith.constant 0 : index
    %c0_3 = arith.constant 0 : index
    %2 = vector.load %arg2[%c1, %c0_2, %c0_3] : memref<2x1x128xf32, #tpu.memory_space<vmem>>, vector<1x1x128xf32>
    %3 = vector.shape_cast %2 : vector<1x1x128xf32> to vector<1x128xf32>
    %c0_4 = arith.constant 0 : index
    %4 = memref.load %arg1[%c0_4] : memref<37xf32, #tpu.memory_space<smem>>
    %5 = vector.broadcast %4 : f32 to vector<1x128xf32>
    %6 = arith.mulf %5, %1 : vector<1x128xf32>
    %c1_5 = arith.constant 1 : index
    %7 = memref.load %arg1[%c1_5] : memref<37xf32, #tpu.memory_space<smem>>
    %8 = vector.broadcast %7 : f32 to vector<1x128xf32>
    %9 = arith.mulf %8, %3 : vector<1x128xf32>
    %10 = arith.addf %6, %9 : vector<1x128xf32>
    %c8 = arith.constant 8 : index
    %11 = memref.load %arg1[%c8] : memref<37xf32, #tpu.memory_space<smem>>
    %12 = vector.broadcast %11 : f32 to vector<1x128xf32>
    %13 = arith.addf %10, %12 : vector<1x128xf32>
    %cst = arith.constant 5.000000e-01 : f32
    %14 = vector.broadcast %cst : f32 to vector<1x128xf32>
    %15 = arith.mulf %14, %13 : vector<1x128xf32>
    %16 = math.tanh %15 : vector<1x128xf32>
    %cst_6 = arith.constant 5.000000e-01 : f32
    %17 = vector.broadcast %cst_6 : f32 to vector<1x128xf32>
    %18 = arith.mulf %17, %16 : vector<1x128xf32>
    %cst_7 = arith.constant 5.000000e-01 : f32
    %19 = vector.broadcast %cst_7 : f32 to vector<1x128xf32>
    %20 = arith.addf %18, %19 : vector<1x128xf32>
    %c2 = arith.constant 2 : index
    %21 = memref.load %arg1[%c2] : memref<37xf32, #tpu.memory_space<smem>>
    %22 = vector.broadcast %21 : f32 to vector<1x128xf32>
    %23 = arith.mulf %22, %1 : vector<1x128xf32>
    %c3 = arith.constant 3 : index
    %24 = memref.load %arg1[%c3] : memref<37xf32, #tpu.memory_space<smem>>
    %25 = vector.broadcast %24 : f32 to vector<1x128xf32>
    %26 = arith.mulf %25, %3 : vector<1x128xf32>
    %27 = arith.addf %23, %26 : vector<1x128xf32>
    %c9 = arith.constant 9 : index
    %28 = memref.load %arg1[%c9] : memref<37xf32, #tpu.memory_space<smem>>
    %29 = vector.broadcast %28 : f32 to vector<1x128xf32>
    %30 = arith.addf %27, %29 : vector<1x128xf32>
    %cst_8 = arith.constant 5.000000e-01 : f32
    %31 = vector.broadcast %cst_8 : f32 to vector<1x128xf32>
    %32 = arith.mulf %31, %30 : vector<1x128xf32>
    %33 = math.tanh %32 : vector<1x128xf32>
    %cst_9 = arith.constant 5.000000e-01 : f32
    %34 = vector.broadcast %cst_9 : f32 to vector<1x128xf32>
    %35 = arith.mulf %34, %33 : vector<1x128xf32>
    %cst_10 = arith.constant 5.000000e-01 : f32
    %36 = vector.broadcast %cst_10 : f32 to vector<1x128xf32>
    %37 = arith.addf %35, %36 : vector<1x128xf32>
    %c4 = arith.constant 4 : index
    %38 = memref.load %arg1[%c4] : memref<37xf32, #tpu.memory_space<smem>>
    %39 = vector.broadcast %38 : f32 to vector<1x128xf32>
    %40 = arith.mulf %39, %1 : vector<1x128xf32>
    %c5 = arith.constant 5 : index
    %41 = memref.load %arg1[%c5] : memref<37xf32, #tpu.memory_space<smem>>
    %42 = vector.broadcast %41 : f32 to vector<1x128xf32>
    %43 = arith.mulf %42, %3 : vector<1x128xf32>
    %44 = arith.addf %40, %43 : vector<1x128xf32>
    %c10 = arith.constant 10 : index
    %45 = memref.load %arg1[%c10] : memref<37xf32, #tpu.memory_space<smem>>
    %46 = vector.broadcast %45 : f32 to vector<1x128xf32>
    %47 = arith.addf %44, %46 : vector<1x128xf32>
    %cst_11 = arith.constant 5.000000e-01 : f32
    %48 = vector.broadcast %cst_11 : f32 to vector<1x128xf32>
    %49 = arith.mulf %48, %47 : vector<1x128xf32>
    %50 = math.tanh %49 : vector<1x128xf32>
    %cst_12 = arith.constant 5.000000e-01 : f32
    %51 = vector.broadcast %cst_12 : f32 to vector<1x128xf32>
    %52 = arith.mulf %51, %50 : vector<1x128xf32>
    %cst_13 = arith.constant 5.000000e-01 : f32
    %53 = vector.broadcast %cst_13 : f32 to vector<1x128xf32>
    %54 = arith.addf %52, %53 : vector<1x128xf32>
    %c6 = arith.constant 6 : index
    %55 = memref.load %arg1[%c6] : memref<37xf32, #tpu.memory_space<smem>>
    %56 = vector.broadcast %55 : f32 to vector<1x128xf32>
    %57 = arith.mulf %56, %1 : vector<1x128xf32>
    %c7 = arith.constant 7 : index
    %58 = memref.load %arg1[%c7] : memref<37xf32, #tpu.memory_space<smem>>
    %59 = vector.broadcast %58 : f32 to vector<1x128xf32>
    %60 = arith.mulf %59, %3 : vector<1x128xf32>
    %61 = arith.addf %57, %60 : vector<1x128xf32>
    %c11 = arith.constant 11 : index
    %62 = memref.load %arg1[%c11] : memref<37xf32, #tpu.memory_space<smem>>
    %63 = vector.broadcast %62 : f32 to vector<1x128xf32>
    %64 = arith.addf %61, %63 : vector<1x128xf32>
    %cst_14 = arith.constant 5.000000e-01 : f32
    %65 = vector.broadcast %cst_14 : f32 to vector<1x128xf32>
    %66 = arith.mulf %65, %64 : vector<1x128xf32>
    %67 = math.tanh %66 : vector<1x128xf32>
    %cst_15 = arith.constant 5.000000e-01 : f32
    %68 = vector.broadcast %cst_15 : f32 to vector<1x128xf32>
    %69 = arith.mulf %68, %67 : vector<1x128xf32>
    %cst_16 = arith.constant 5.000000e-01 : f32
    %70 = vector.broadcast %cst_16 : f32 to vector<1x128xf32>
    %71 = arith.addf %69, %70 : vector<1x128xf32>
    %c28 = arith.constant 28 : index
    %72 = memref.load %arg1[%c28] : memref<37xf32, #tpu.memory_space<smem>>
    %c12 = arith.constant 12 : index
    %73 = memref.load %arg1[%c12] : memref<37xf32, #tpu.memory_space<smem>>
    %74 = vector.broadcast %73 : f32 to vector<1x128xf32>
    %75 = arith.mulf %74, %20 : vector<1x128xf32>
    %76 = vector.broadcast %72 : f32 to vector<1x128xf32>
    %77 = arith.addf %76, %75 : vector<1x128xf32>
    %c13 = arith.constant 13 : index
    %78 = memref.load %arg1[%c13] : memref<37xf32, #tpu.memory_space<smem>>
    %79 = vector.broadcast %78 : f32 to vector<1x128xf32>
    %80 = arith.mulf %79, %37 : vector<1x128xf32>
    %81 = arith.addf %77, %80 : vector<1x128xf32>
    %c14 = arith.constant 14 : index
    %82 = memref.load %arg1[%c14] : memref<37xf32, #tpu.memory_space<smem>>
    %83 = vector.broadcast %82 : f32 to vector<1x128xf32>
    %84 = arith.mulf %83, %54 : vector<1x128xf32>
    %85 = arith.addf %81, %84 : vector<1x128xf32>
    %c15 = arith.constant 15 : index
    %86 = memref.load %arg1[%c15] : memref<37xf32, #tpu.memory_space<smem>>
    %87 = vector.broadcast %86 : f32 to vector<1x128xf32>
    %88 = arith.mulf %87, %71 : vector<1x128xf32>
    %89 = arith.addf %85, %88 : vector<1x128xf32>
    %cst_17 = arith.constant 5.000000e-01 : f32
    %90 = vector.broadcast %cst_17 : f32 to vector<1x128xf32>
    %91 = arith.mulf %90, %89 : vector<1x128xf32>
    %92 = math.tanh %91 : vector<1x128xf32>
    %cst_18 = arith.constant 5.000000e-01 : f32
    %93 = vector.broadcast %cst_18 : f32 to vector<1x128xf32>
    %94 = arith.mulf %93, %92 : vector<1x128xf32>
    %cst_19 = arith.constant 5.000000e-01 : f32
    %95 = vector.broadcast %cst_19 : f32 to vector<1x128xf32>
    %96 = arith.addf %94, %95 : vector<1x128xf32>
    %c29 = arith.constant 29 : index
    %97 = memref.load %arg1[%c29] : memref<37xf32, #tpu.memory_space<smem>>
    %c16 = arith.constant 16 : index
    %98 = memref.load %arg1[%c16] : memref<37xf32, #tpu.memory_space<smem>>
    %99 = vector.broadcast %98 : f32 to vector<1x128xf32>
    %100 = arith.mulf %99, %20 : vector<1x128xf32>
    %101 = vector.broadcast %97 : f32 to vector<1x128xf32>
    %102 = arith.addf %101, %100 : vector<1x128xf32>
    %c17 = arith.constant 17 : index
    %103 = memref.load %arg1[%c17] : memref<37xf32, #tpu.memory_space<smem>>
    %104 = vector.broadcast %103 : f32 to vector<1x128xf32>
    %105 = arith.mulf %104, %37 : vector<1x128xf32>
    %106 = arith.addf %102, %105 : vector<1x128xf32>
    %c18 = arith.constant 18 : index
    %107 = memref.load %arg1[%c18] : memref<37xf32, #tpu.memory_space<smem>>
    %108 = vector.broadcast %107 : f32 to vector<1x128xf32>
    %109 = arith.mulf %108, %54 : vector<1x128xf32>
    %110 = arith.addf %106, %109 : vector<1x128xf32>
    %c19 = arith.constant 19 : index
    %111 = memref.load %arg1[%c19] : memref<37xf32, #tpu.memory_space<smem>>
    %112 = vector.broadcast %111 : f32 to vector<1x128xf32>
    %113 = arith.mulf %112, %71 : vector<1x128xf32>
    %114 = arith.addf %110, %113 : vector<1x128xf32>
    %cst_20 = arith.constant 5.000000e-01 : f32
    %115 = vector.broadcast %cst_20 : f32 to vector<1x128xf32>
    %116 = arith.mulf %115, %114 : vector<1x128xf32>
    %117 = math.tanh %116 : vector<1x128xf32>
    %cst_21 = arith.constant 5.000000e-01 : f32
    %118 = vector.broadcast %cst_21 : f32 to vector<1x128xf32>
    %119 = arith.mulf %118, %117 : vector<1x128xf32>
    %cst_22 = arith.constant 5.000000e-01 : f32
    %120 = vector.broadcast %cst_22 : f32 to vector<1x128xf32>
    %121 = arith.addf %119, %120 : vector<1x128xf32>
    %c30 = arith.constant 30 : index
    %122 = memref.load %arg1[%c30] : memref<37xf32, #tpu.memory_space<smem>>
    %c20 = arith.constant 20 : index
    %123 = memref.load %arg1[%c20] : memref<37xf32, #tpu.memory_space<smem>>
    %124 = vector.broadcast %123 : f32 to vector<1x128xf32>
    %125 = arith.mulf %124, %20 : vector<1x128xf32>
    %126 = vector.broadcast %122 : f32 to vector<1x128xf32>
    %127 = arith.addf %126, %125 : vector<1x128xf32>
    %c21 = arith.constant 21 : index
    %128 = memref.load %arg1[%c21] : memref<37xf32, #tpu.memory_space<smem>>
    %129 = vector.broadcast %128 : f32 to vector<1x128xf32>
    %130 = arith.mulf %129, %37 : vector<1x128xf32>
    %131 = arith.addf %127, %130 : vector<1x128xf32>
    %c22 = arith.constant 22 : index
    %132 = memref.load %arg1[%c22] : memref<37xf32, #tpu.memory_space<smem>>
    %133 = vector.broadcast %132 : f32 to vector<1x128xf32>
    %134 = arith.mulf %133, %54 : vector<1x128xf32>
    %135 = arith.addf %131, %134 : vector<1x128xf32>
    %c23 = arith.constant 23 : index
    %136 = memref.load %arg1[%c23] : memref<37xf32, #tpu.memory_space<smem>>
    %137 = vector.broadcast %136 : f32 to vector<1x128xf32>
    %138 = arith.mulf %137, %71 : vector<1x128xf32>
    %139 = arith.addf %135, %138 : vector<1x128xf32>
    %cst_23 = arith.constant 5.000000e-01 : f32
    %140 = vector.broadcast %cst_23 : f32 to vector<1x128xf32>
    %141 = arith.mulf %140, %139 : vector<1x128xf32>
    %142 = math.tanh %141 : vector<1x128xf32>
    %cst_24 = arith.constant 5.000000e-01 : f32
    %143 = vector.broadcast %cst_24 : f32 to vector<1x128xf32>
    %144 = arith.mulf %143, %142 : vector<1x128xf32>
    %cst_25 = arith.constant 5.000000e-01 : f32
    %145 = vector.broadcast %cst_25 : f32 to vector<1x128xf32>
    %146 = arith.addf %144, %145 : vector<1x128xf32>
    %c31 = arith.constant 31 : index
    %147 = memref.load %arg1[%c31] : memref<37xf32, #tpu.memory_space<smem>>
    %c24 = arith.constant 24 : index
    %148 = memref.load %arg1[%c24] : memref<37xf32, #tpu.memory_space<smem>>
    %149 = vector.broadcast %148 : f32 to vector<1x128xf32>
    %150 = arith.mulf %149, %20 : vector<1x128xf32>
    %151 = vector.broadcast %147 : f32 to vector<1x128xf32>
    %152 = arith.addf %151, %150 : vector<1x128xf32>
    %c25 = arith.constant 25 : index
    %153 = memref.load %arg1[%c25] : memref<37xf32, #tpu.memory_space<smem>>
    %154 = vector.broadcast %153 : f32 to vector<1x128xf32>
    %155 = arith.mulf %154, %37 : vector<1x128xf32>
    %156 = arith.addf %152, %155 : vector<1x128xf32>
    %c26 = arith.constant 26 : index
    %157 = memref.load %arg1[%c26] : memref<37xf32, #tpu.memory_space<smem>>
    %158 = vector.broadcast %157 : f32 to vector<1x128xf32>
    %159 = arith.mulf %158, %54 : vector<1x128xf32>
    %160 = arith.addf %156, %159 : vector<1x128xf32>
    %c27 = arith.constant 27 : index
    %161 = memref.load %arg1[%c27] : memref<37xf32, #tpu.memory_space<smem>>
    %162 = vector.broadcast %161 : f32 to vector<1x128xf32>
    %163 = arith.mulf %162, %71 : vector<1x128xf32>
    %164 = arith.addf %160, %163 : vector<1x128xf32>
    %cst_26 = arith.constant 5.000000e-01 : f32
    %165 = vector.broadcast %cst_26 : f32 to vector<1x128xf32>
    %166 = arith.mulf %165, %164 : vector<1x128xf32>
    %167 = math.tanh %166 : vector<1x128xf32>
    %cst_27 = arith.constant 5.000000e-01 : f32
    %168 = vector.broadcast %cst_27 : f32 to vector<1x128xf32>
    %169 = arith.mulf %168, %167 : vector<1x128xf32>
    %cst_28 = arith.constant 5.000000e-01 : f32
    %170 = vector.broadcast %cst_28 : f32 to vector<1x128xf32>
    %171 = arith.addf %169, %170 : vector<1x128xf32>
    %c36 = arith.constant 36 : index
    %172 = memref.load %arg1[%c36] : memref<37xf32, #tpu.memory_space<smem>>
    %c32 = arith.constant 32 : index
    %173 = memref.load %arg1[%c32] : memref<37xf32, #tpu.memory_space<smem>>
    %174 = vector.broadcast %173 : f32 to vector<1x128xf32>
    %175 = arith.mulf %174, %96 : vector<1x128xf32>
    %176 = vector.broadcast %172 : f32 to vector<1x128xf32>
    %177 = arith.addf %176, %175 : vector<1x128xf32>
    %c33 = arith.constant 33 : index
    %178 = memref.load %arg1[%c33] : memref<37xf32, #tpu.memory_space<smem>>
    %179 = vector.broadcast %178 : f32 to vector<1x128xf32>
    %180 = arith.mulf %179, %121 : vector<1x128xf32>
    %181 = arith.addf %177, %180 : vector<1x128xf32>
    %c34 = arith.constant 34 : index
    %182 = memref.load %arg1[%c34] : memref<37xf32, #tpu.memory_space<smem>>
    %183 = vector.broadcast %182 : f32 to vector<1x128xf32>
    %184 = arith.mulf %183, %146 : vector<1x128xf32>
    %185 = arith.addf %181, %184 : vector<1x128xf32>
    %c35 = arith.constant 35 : index
    %186 = memref.load %arg1[%c35] : memref<37xf32, #tpu.memory_space<smem>>
    %187 = vector.broadcast %186 : f32 to vector<1x128xf32>
    %188 = arith.mulf %187, %171 : vector<1x128xf32>
    %189 = arith.addf %185, %188 : vector<1x128xf32>
    %cst_29 = arith.constant 5.000000e-01 : f32
    %190 = vector.broadcast %cst_29 : f32 to vector<1x128xf32>
    %191 = arith.mulf %190, %189 : vector<1x128xf32>
    %192 = math.tanh %191 : vector<1x128xf32>
    %cst_30 = arith.constant 5.000000e-01 : f32
    %193 = vector.broadcast %cst_30 : f32 to vector<1x128xf32>
    %194 = arith.mulf %193, %192 : vector<1x128xf32>
    %cst_31 = arith.constant 5.000000e-01 : f32
    %195 = vector.broadcast %cst_31 : f32 to vector<1x128xf32>
    %196 = arith.addf %194, %195 : vector<1x128xf32>
    %c0_32 = arith.constant 0 : index
    %c0_33 = arith.constant 0 : index
    %197 = vector.load %arg3[%c0_32, %c0_33] : memref<1x128xf32, #tpu.memory_space<vmem>>, vector<1x128xf32>
    tpu.vector_store %arg3[%c0_32, %c0_33], %196 {strides = array<i32>} : memref<1x128xf32, #tpu.memory_space<vmem>>, vector<1x128xf32>,
    return
  }
  func.func @transform_0(%arg0: i32) -> i32 {
    %c0_i32 = arith.constant 0 : i32
    %c0_i32_0 = arith.constant 0 : i32
    return %c0_i32 : i32
  }
  func.func @transform_1(%arg0: i32) -> (i32, i32, i32) {
    %c0_i32 = arith.constant 0 : i32
    %c0_i32_0 = arith.constant 0 : i32
    %c0_i32_1 = arith.constant 0 : i32
    return %c0_i32, %arg0, %c0_i32_0 : i32, i32, i32
  }
  func.func @transform_2(%arg0: i32) -> (i32, i32) {
    %c0_i32 = arith.constant 0 : i32
    %c0_i32_0 = arith.constant 0 : i32
    return %arg0, %c0_i32 : i32, i32
  }
}

</mosaic_0001>

<bundles_post_ra>
// kernel: tpu_custom_call.1
= control target key start
LH: loop header
LB: loop body
LE: loop exit
PB: predicated region body
PF: predicated region fallthrough
CT: control target
= control target key end

     0   :  { %7 = vsyncpa [#allocation4], 0  ;;  %s420_s0 = inlined_call_operand.hbm [shape: f32[37], index: 0, kind: input, shape index: {}]   ;;  %s421_s1 = inlined_call_operand.vmem [shape: f32[2,1,128], index: 1, kind: input, shape index: {}]   ;;  %s422_s2 = inlined_call_operand.hbm [shape: f32[1,128], index: 2, kind: output, shape index: {}]  }
   0x1   :  { %8 = vsyncpa [#allocation3], 0  ;;  %s265_s11 = scalar_lea.hbm %s420_s0, 16 }
   0x2   :  { %p266_p0 = scmp.ne.s32.totalorder %s420_s0, %s265_s11  ;;  %p269_p1 = scmp.lt.u32.totalorder %s265_s11, %s420_s0 }
   0x4   :  { %p271_p2 = pnand %p269_p1, %p266_p0 }
   0x6   :  { %274 = shalt.err (!%p271_p2)
}
   0x7   :  { %s301_s16 = smov [#allocation2]  }
   0x8   :  { %16 = dma.hbm_to_smem %s420_s0, 16, %s301_s16, [#allocation4]  }
   0x9   :  { %297 = dma.done.wait [#allocation4], 16  }
   0xa   :  { %298 = vsyncadd [#allocation4], 4294967280 }
   0xb   :  { %22 = sfence }
   0xc   :  { %s26_s19 = sld [smem:[#allocation2]]  ;;  %s209_s20 = sld [smem:[#allocation2 + $0x1]]  ;;  %v23_v0 = vld [vmem:[%s421_s1] sm:$0x1]  ;;  %v208_v1 = vld [vmem:[%s421_s1 + $0x1] sm:$0x1] }
   0xd   :  { %s330_s21 = sld [smem:[#allocation2 + $0x8]]  ;;  %s211_s22 = sld [smem:[#allocation2 + $0x2]] }
   0xe   :  { %s212_s23 = sld [smem:[#allocation2 + $0x3]]  ;;  %s332_s24 = sld [smem:[#allocation2 + $0x9]] }
   0xf   :  { %s214_s25 = sld [smem:[#allocation2 + $0x4]]  ;;  %s215_s28 = sld [smem:[#allocation2 + $0x5]] }
  0x10   :  { %s337_s29 = sld [smem:[#allocation2 + $0xa]]  ;;  %s217_s3 = sld [smem:[#allocation2 + $0x6]] }
  0x11   :  { %s218_s4 = sld [smem:[#allocation2 + $0x7]]  ;;  %s342_s5 = sld [smem:[#allocation2 + $0xb]] }
  0x12   :  { %v27_v2 = vstv %s26_s19  ;;  %v30_v4 = vstv %s209_s20  ;;  %s348_s1 = sld [smem:[#allocation2 + $0x1c]]  ;;  %s352_s7 = sld [smem:[#allocation2 + $0xd]] }
  0x13   :  { %v28_v3 = vmul.f32 %v27_v2, %v23_v0  ;;  %v31_v5 = vmul.f32 %v208_v1, %v30_v4  ;;  %v41_v6 = vstv %s211_s22  ;;  %v34_v8 = vstv %s330_s21  ;;  %s350_s6 = sld [smem:[#allocation2 + $0xc]]  ;;  %s354_s8 = sld [smem:[#allocation2 + $0xe]] }
  0x14   :  { %v44_v7 = vstv %s212_s23  ;;  %v42_v9 = vmul.f32 %v41_v6, %v23_v0  ;;  %v48_v13 = vstv %s332_s24  ;;  %s356_s9 = sld [smem:[#allocation2 + $0xf]]  ;;  %s358_s10 = sld [smem:[#allocation2 + $0x1d]] }
  0x15   :  { %v45_v10 = vmul.f32 %v208_v1, %v44_v7  ;;  %v55_v11 = vstv %s214_s25  ;;  %v32_v12 = vadd.f32 %v31_v5, %v28_v3  ;;  %v58_v15 = vstv %s215_s28  ;;  %s360_s11 = sld [smem:[#allocation2 + $0x10]]  ;;  %s362_s12 = sld [smem:[#allocation2 + $0x11]] }
  0x16   :  { %v56_v14 = vmul.f32 %v55_v11, %v23_v0  ;;  %v59_v17 = vmul.f32 %v208_v1, %v58_v15  ;;  %v69_v18 = vstv %s217_s3  ;;  %v62_v21 = vstv %s337_s29  ;;  %s364_s13 = sld [smem:[#allocation2 + $0x12]]  ;;  %s366_s14 = sld [smem:[#allocation2 + $0x13]] }
  0x17   :  { %v46_v16 = vadd.f32 %v45_v10, %v42_v9  ;;  %v72_v19 = vstv %s218_s4  ;;  %v35_v20 = vadd.f32 %v34_v8, %v32_v12  ;;  %v70_v22 = vmul.f32 %v69_v18, %v23_v0  ;;  %s368_s15 = sld [smem:[#allocation2 + $0x1e]]  ;;  %s370_s16 = sld [smem:[#allocation2 + $0x14]] }
  0x18   :  { %v73_v23 = vmul.f32 %v208_v1, %v72_v19  ;;  %v60_v25 = vadd.f32 %v59_v17, %v56_v14  ;;  %v76_v26 = vstv %s342_s5  ;;  %s372_s17 = sld [smem:[#allocation2 + $0x15]]  ;;  %s374_s18 = sld [smem:[#allocation2 + $0x16]]  ;;  %v86_v35 = vstv %s348_s1 }
  0x19   :  { %v49_v24 = vadd.f32 %v48_v13, %v46_v16  ;;  %v36_v27 = vmul.f32 0.5, %v35_v20  ;;  %s376_s19 = sld [smem:[#allocation2 + $0x17]]  ;;  %s380_s21 = sld [smem:[#allocation2 + $0x18]]  ;;  %v84_v34 = vstv %s350_s6  ;;  %v89_v36 = vstv %s352_s7 }
  0x1a   :  { %v74_v28 = vadd.f32 %v73_v23, %v70_v22  ;;  %v63_v30 = vadd.f32 %v62_v21, %v60_v25  ;;  %s378_s20 = sld [smem:[#allocation2 + $0x1f]]  ;;  %s382_s22 = sld [smem:[#allocation2 + $0x19]]  ;;  %v93_v37 = vstv %s354_s8  ;;  %v97_v38 = vstv %s356_s9 }
  0x1b   :  { %v50_v29 = vmul.f32 0.5, %v49_v24  ;;  %247 = vtanh.f32 %v36_v27  ;;  %s384_s23 = sld [smem:[#allocation2 + $0x1a]]  ;;  %s386_s24 = sld [smem:[#allocation2 + $0x1b]]  ;;  %v106_v40 = vstv %s360_s11  ;;  %v108_v41 = vstv %s358_s10 }
  0x1c   :  { %v77_v31 = vadd.f32 %v76_v26, %v74_v28  ;;  %v64_v32 = vmul.f32 0.5, %v63_v30  ;;  %v111_v42 = vstv %s362_s12  ;;  %v115_v43 = vstv %s364_s13  ;;  %s241_s25 = sld [smem:[#allocation2 + $0x20]]  ;;  %s242_s26 = sld [smem:[#allocation2 + $0x21]] }
  0x1d   :  { %249 = vtanh.f32 %v50_v29  ;;  %v119_v46 = vstv %s366_s14  ;;  %v128_v47 = vstv %s370_s16  ;;  %v130_v48 = vstv %s368_s15  ;;  %s240_s27 = sld [smem:[#allocation2 + $0x24]]  ;;  %s243_s28 = sld [smem:[#allocation2 + $0x22]] }
  0x1e   :  { %v78_v33 = vmul.f32 0.5, %v77_v31  ;;  %251 = vtanh.f32 %v64_v32  ;;  %v133_v50 = vstv %s372_s17  ;;  %v137_v51 = vstv %s374_s18  ;;  %s244_s29 = sld [smem:[#allocation2 + $0x23]]  ;;  %s302_s0 = smov [#allocation5]  }
  0x1f   :  { %v141_v52 = vstv %s376_s19  ;;  %v150_v55 = vstv %s380_s21  ;;  %s199_s30 = sshll.u32 %s302_s0, 4  ;;  %s200_s30 = int_to_ptr.vmem [resolvable:$true] %s199_s30 }
  0x20   :  { %253 = vtanh.f32 %v78_v33  ;;  %v152_v56 = vstv %s378_s20  ;;  %v155_v57 = vstv %s382_s22  ;;  %s275_s3 = scalar_lea.vmem %s200_s30, 16  ;;  %s279_s4 = scalar_lea.vmem %s200_s30, 32 }
  0x21   :  { %v159_v61 = vstv %s384_s23  ;;  %v163_v62 = vstv %s386_s24  ;;  %p276_p3 = scmp.ne.s32.totalorder %s200_s30, %s275_s3  ;;  %p280_p4 = scmp.lt.s32.totalorder %s200_s30, %s200_s30 }
  0x22   :  { %p281_p5 = scmp.lt.s32.totalorder %s279_s4, %s275_s3 }
  0x24   :  { %p282_p6 = por %p281_p5, %p280_p4 }
  0x25   :  { %v248_v39 = vpop.eup %247 }
  0x26   :  { %v38_v45 = vmul.f32 0.5, %v248_v39  ;;  %p283_p7 = pnand %p282_p6, %p276_p3 }
  0x27   :  { %v250_v44 = vpop.eup %249 }
  0x28   :  { %v52_v49 = vmul.f32 0.5, %v250_v44  ;;  %v252_v53 = vpop.eup %251  ;;  %v39_v54 = vadd.f32 0.5, %v38_v45 }
  0x29   :  { %v66_v60 = vmul.f32 0.5, %v252_v53 }
  0x2a   :  { %v254_v58 = vpop.eup %253  ;;  %v53_v59 = vadd.f32 0.5, %v52_v49  ;;  %v85_v0 = vmul.f32 %v84_v34, %v39_v54  ;;  %v107_v1 = vmul.f32 %v106_v40, %v39_v54  ;;  %v129_v2 = vmul.f32 %v128_v47, %v39_v54 }
  0x2b   :  { %v80_v63 = vmul.f32 0.5, %v254_v58  ;;  %v67_v3 = vadd.f32 0.5, %v66_v60  ;;  %v151_v14 = vmul.f32 %v150_v55, %v39_v54  ;;  %v177_v47 = vstv %s242_s26 }
  0x2c   :  { %v90_v4 = vmul.f32 %v89_v36, %v53_v59  ;;  %v112_v5 = vmul.f32 %v111_v42, %v53_v59  ;;  %v134_v6 = vmul.f32 %v133_v50, %v53_v59  ;;  %v87_v8 = vadd.f32 %v86_v35, %v85_v0 }
  0x2d   :  { %v81_v7 = vadd.f32 0.5, %v80_v63  ;;  %v109_v9 = vadd.f32 %v108_v41, %v107_v1  ;;  %v131_v10 = vadd.f32 %v130_v48, %v129_v2  ;;  %v94_v11 = vmul.f32 %v93_v37, %v67_v3 }
  0x2e   :  { %v116_v12 = vmul.f32 %v115_v43, %v67_v3  ;;  %v138_v13 = vmul.f32 %v137_v51, %v67_v3  ;;  %v91_v15 = vadd.f32 %v90_v4, %v87_v8  ;;  %v153_v21 = vadd.f32 %v152_v56, %v151_v14 }
  0x2f   :  { %v98_v16 = vmul.f32 %v97_v38, %v81_v7  ;;  %v113_v17 = vadd.f32 %v112_v5, %v109_v9  ;;  %v120_v18 = vmul.f32 %v119_v46, %v81_v7  ;;  %v135_v19 = vadd.f32 %v134_v6, %v131_v10 }
  0x30   :  { %v142_v20 = vmul.f32 %v141_v52, %v81_v7  ;;  %v156_v22 = vmul.f32 %v155_v57, %v53_v59  ;;  %v95_v23 = vadd.f32 %v94_v11, %v91_v15  ;;  %v160_v25 = vmul.f32 %v159_v61, %v67_v3 }
  0x31   :  { %v117_v24 = vadd.f32 %v116_v12, %v113_v17  ;;  %v139_v26 = vadd.f32 %v138_v13, %v135_v19  ;;  %v164_v28 = vmul.f32 %v163_v62, %v81_v7  ;;  %v172_v43 = vstv %s241_s25 }
  0x32   :  { %v157_v27 = vadd.f32 %v156_v22, %v153_v21  ;;  %v99_v29 = vadd.f32 %v98_v16, %v95_v23  ;;  %v174_v50 = vstv %s240_s27  ;;  %v181_v51 = vstv %s243_s28 }
  0x33   :  { %v121_v30 = vadd.f32 %v120_v18, %v117_v24  ;;  %v143_v31 = vadd.f32 %v142_v20, %v139_v26  ;;  %v185_v56 = vstv %s244_s29 }
  0x34   :  { %v161_v32 = vadd.f32 %v160_v25, %v157_v27  ;;  %v100_v33 = vmul.f32 0.5, %v99_v29 }
  0x35   :  { %v122_v34 = vmul.f32 0.5, %v121_v30  ;;  %v144_v35 = vmul.f32 0.5, %v143_v31 }
  0x36   :  { %v165_v36 = vadd.f32 %v164_v28, %v161_v32  ;;  %255 = vtanh.f32 %v100_v33 }
  0x37   :  { %257 = vtanh.f32 %v122_v34 }
  0x38   :  { %v166_v37 = vmul.f32 0.5, %v165_v36  ;;  %259 = vtanh.f32 %v144_v35 }
  0x3a   :  { %261 = vtanh.f32 %v166_v37 }
  0x40   :  { %v256_v38 = vpop.eup %255 }
  0x41   :  { %v258_v39 = vpop.eup %257  ;;  %v102_v40 = vmul.f32 0.5, %v256_v38 }
  0x42   :  { %v260_v41 = vpop.eup %259  ;;  %v124_v42 = vmul.f32 0.5, %v258_v39 }
  0x43   :  { %v103_v45 = vadd.f32 0.5, %v102_v40  ;;  %v146_v46 = vmul.f32 0.5, %v260_v41 }
  0x44   :  { %v262_v44 = vpop.eup %261  ;;  %v125_v48 = vadd.f32 0.5, %v124_v42 }
  0x45   :  { %v168_v49 = vmul.f32 0.5, %v262_v44  ;;  %v147_v52 = vadd.f32 0.5, %v146_v46  ;;  %v173_v53 = vmul.f32 %v172_v43, %v103_v45 }
  0x46   :  { %v178_v55 = vmul.f32 %v177_v47, %v125_v48 }
  0x47   :  { %v169_v54 = vadd.f32 0.5, %v168_v49  ;;  %v175_v57 = vadd.f32 %v174_v50, %v173_v53  ;;  %v182_v58 = vmul.f32 %v181_v51, %v147_v52 }
  0x49   :  { %v179_v59 = vadd.f32 %v178_v55, %v175_v57  ;;  %v186_v60 = vmul.f32 %v185_v56, %v169_v54 }
  0x4b   :  { %v183_v61 = vadd.f32 %v182_v58, %v179_v59 }
  0x4d   :  { %v187_v62 = vadd.f32 %v186_v60, %v183_v61 }
  0x4f   :  { %v188_v63 = vmul.f32 0.5, %v187_v62 }
  0x51   :  { %263 = vtanh.f32 %v188_v63 }
  0x5b   :  { %v264_v0 = vpop.eup %263 }
  0x5c   :  { %v190_v1 = vmul.f32 0.5, %v264_v0 }
  0x5e   :  { %v191_v2 = vadd.f32 0.5, %v190_v1 }
  0x60   :  { %192 = vst [vmem:[#allocation5] sm:$0x1] %v191_v2 }
  0x61   :  { %286 = shalt.err (!%p283_p7)
}
  0x62   :  { %s287_s6 = scalar_lea.hbm %s422_s2, 16 }
  0x63   :  { %p288_p8 = scmp.ne.s32.totalorder %s422_s2, %s287_s6  ;;  %p291_p9 = scmp.lt.u32.totalorder %s287_s6, %s422_s2 }
  0x65   :  { %p293_p10 = pnand %p291_p9, %p288_p8 }
  0x67   :  { %296 = shalt.err (!%p293_p10)
}
  0x68   :  { %202 = dma.vmem_to_hbm [thread:$0]  %s200_s30, 16, %s422_s2, [#allocation3]  }
  0x69   :  { %299 = dma.done.wait [#allocation3], 16  }
  0x6a   :  { %300 = vsyncadd [#allocation3], 4294967280 }
  0x6b   :  { %206 = vsyncpa [#allocation3], 1 }
  0x6c   :  { %207 = vsyncpa [#allocation4], 1 }

</bundles_post_ra>
